<compile_context>
chip_gen: v7x
topology: tpu7x:2x2x1
jax: 0.10.0
libtpu: 0.0.40
codegen_flags: <defaults>
</compile_context>

<pallas_src>
import functools

import jax
import jax.numpy as jnp
from jax import lax
from jax.experimental import pallas as pl
from jax.experimental.pallas import tpu as pltpu


_ONEHOT_MAX_NDATA = 4096       # one-hot MXU gather only for small tables
_IDX_CHUNK = 128 * 1024        # max scalar-prefetched indices per pallas_call


def _round_up(x: int, m: int) -> int:
    return (x + m - 1) // m * m


def _vmem_capacity_bytes() -> int:
    try:
        return int(pltpu.get_tpu_info().vmem_capacity_bytes)
    except Exception:
        return 64 << 20        # conservative default: v7x per-core VMEM


def _resident_table_limit_bytes() -> int:
    # The table may still be double-buffered if pl.Buffered(1) is unavailable,
    # so keep it <= ~35% of physical VMEM (~45 MiB v5e/v6e, ~22 MiB v7x).
    return int(0.35 * _vmem_capacity_bytes())


def _vmem_limit_bytes(*components: int, headroom: int = 8 << 20) -> int:
    cap = int(0.9 * _vmem_capacity_bytes())
    need = sum(int(c) for c in components) + headroom
    return min(max(need, 32 << 20), cap)


def _pick_rows_per_block(n: int, dim_p: int, itemsize: int) -> int:
    # ~2 MiB of gathered rows per grid step (amortize ~0.35us/step overhead),
    # clamped to [64, 1024] and to n, rounded to a multiple of 8 sublanes.
    r = (2 << 20) // max(1, dim_p * itemsize)
    r = max(64, min(1024, r))
    r = min(r, _round_up(max(n, 1), 8))
    return _round_up(r, 8)


def _cap_rows_for_onehot(r: int, ndata: int) -> int:
    # Keep the (R, ndata) f32 one-hot temporary <= ~2 MiB.
    cap = max(8, ((2 << 20) // max(1, ndata * 4)) // 8 * 8)
    return max(8, min(r, cap))


# ---------------------------------------------------------------------------
# Path A: one-hot MXU gather (small resident tables)
# ---------------------------------------------------------------------------
def _onehot_gather_kernel(ndata, idx_ref, feat_ref, out_ref):
    # idx_ref: (R, 1) int32 VMEM; feat_ref: (ndata, dim_p) VMEM (resident).
    r = idx_ref.shape[0]
    iota = lax.broadcasted_iota(jnp.int32, (r, ndata), 1)
    onehot = (iota == idx_ref[...]).astype(feat_ref.dtype)
    out_ref[...] = jnp.dot(
        onehot, feat_ref[...], preferred_element_type=jnp.float32
    ).astype(out_ref.dtype)


def _gather_onehot(features, idxs_2d, R, num_blocks, n_pad, single_buffer):
    ndata, dim_p = features.shape
    itemsize = features.dtype.itemsize
    table_bytes = ndata * dim_p * itemsize
    out_block_bytes = R * dim_p * itemsize
    vmem_limit = _vmem_limit_bytes(
        (1 if single_buffer else 2) * table_bytes,
        2 * out_block_bytes,          # double-buffered output blocks
        2 * R * 4,                    # index blocks
        3 * R * ndata * 4)            # one-hot + iota temporaries
    table_kwargs = {"pipeline_mode": pl.Buffered(1)} if single_buffer else {}
    return pl.pallas_call(
        functools.partial(_onehot_gather_kernel, ndata),
        out_shape=jax.ShapeDtypeStruct((n_pad, dim_p), features.dtype),
        grid=(num_blocks,),
        in_specs=[
            pl.BlockSpec((R, 1), lambda i: (i, 0)),
            # Constant block index -> table fetched once, stays in VMEM.
            pl.BlockSpec((ndata, dim_p), lambda i: (0, 0), **table_kwargs),
        ],
        out_specs=pl.BlockSpec((R, dim_p), lambda i: (i, 0)),
        compiler_params=pltpu.CompilerParams(
            dimension_semantics=("parallel",),
            vmem_limit_bytes=vmem_limit),
        cost_estimate=pl.CostEstimate(
            flops=2 * n_pad * ndata * dim_p, transcendentals=0,
            bytes_accessed=int(table_bytes + n_pad * dim_p * itemsize + n_pad * 4)),
    )(idxs_2d, features)


# ---------------------------------------------------------------------------
# Path B: resident table, 8-row grouped gather (dense (8, dim) stores)
# ---------------------------------------------------------------------------
def _resident_gather_kernel(rows_per_block, idxs_ref, feat_ref, out_ref):
    # idxs_ref: (n_chunk,) int32 in SMEM (scalar prefetch); feat_ref resident.
    base = pl.program_id(0) * rows_per_block
    num_groups = rows_per_block // 8

    def group_body(g, carry):
        off = pl.multiple_of(g * 8, 8)
        rows = [feat_ref[pl.ds(idxs_ref[base + off + j], 1), :] for j in range(8)]
        out_ref[pl.ds(off, 8), :] = jnp.concatenate(rows, axis=0)
        return carry

    lax.fori_loop(0, num_groups, group_body, 0)


def _gather_resident(features, idxs_flat, R, num_blocks, n_pad, single_buffer):
    ndata, dim_p = features.shape
    itemsize = features.dtype.itemsize
    table_bytes = ndata * dim_p * itemsize
    out_block_bytes = R * dim_p * itemsize
    vmem_limit = _vmem_limit_bytes(
        (1 if single_buffer else 2) * table_bytes, 2 * out_block_bytes)
    table_kwargs = {"pipeline_mode": pl.Buffered(1)} if single_buffer else {}
    return pl.pallas_call(
        functools.partial(_resident_gather_kernel, R),
        out_shape=jax.ShapeDtypeStruct((n_pad, dim_p), features.dtype),
        grid_spec=pltpu.PrefetchScalarGridSpec(
            num_scalar_prefetch=1,                 # idxs -> SMEM
            grid=(num_blocks,),
            in_specs=[pl.BlockSpec((ndata, dim_p),
                                   lambda i, idxs_sm: (0, 0), **table_kwargs)],
            out_specs=pl.BlockSpec((R, dim_p), lambda i, idxs_sm: (i, 0)),
        ),
        # TODO(synk): on v7x, switch to CORE_PARALLEL if a profile shows only
        # one TensorCore busy.
        compiler_params=pltpu.CompilerParams(
            dimension_semantics=("parallel",),
            vmem_limit_bytes=vmem_limit),
        cost_estimate=pl.CostEstimate(
            flops=0, transcendentals=0,
            bytes_accessed=int(table_bytes + n_pad * dim_p * itemsize + n_pad * 4)),
    )(idxs_flat, features)


# ---------------------------------------------------------------------------
# Path C: HBM table, row DMAs double-buffered across grid steps
# ---------------------------------------------------------------------------
def _dma_gather_kernel(rows_per_block, idxs_ref, feat_hbm, out_ref, buf, sems):
    i = pl.program_id(0)
    nb = pl.num_programs(0)
    slot = i % 2

    def start_block(block, into_slot):
        base = block * rows_per_block

        def issue(j, carry):
            row = idxs_ref[base + j]                      # scalar from SMEM
            pltpu.make_async_copy(
                feat_hbm.at[pl.ds(row, 1), :],            # HBM table row
                buf.at[into_slot, pl.ds(j, 1), :],        # VMEM scratch row
                sems.at[into_slot],
            ).start()
            return carry

        lax.fori_loop(0, rows_per_block, issue, 0)

    @pl.when(i == 0)
    def _():
        start_block(0, 0)                                 # prime slot 0

    @pl.when(i + 1 < nb)
    def _():
        start_block(i + 1, 1 - slot)                      # prefetch next block

    # Wait for this block's row copies.  All copies share sems[slot] and have
    # the identical (1, dim_p) shape, so waiting rows_per_block times is exact.
    def drain(j, carry):
        pltpu.make_async_copy(
            feat_hbm.at[pl.ds(0, 1), :],
            buf.at[slot, pl.ds(0, 1), :],
            sems.at[slot],
        ).wait()
        return carry

    lax.fori_loop(0, rows_per_block, drain, 0)

    out_ref[...] = buf[slot]                              # one dense (R, dim) store


def _gather_dma(features, idxs_flat, R, num_blocks, n_pad):
    ndata, dim_p = features.shape
    itemsize = features.dtype.itemsize
    out_block_bytes = R * dim_p * itemsize
    vmem_limit = _vmem_limit_bytes(2 * out_block_bytes,   # output double-buffer
                                   2 * out_block_bytes)   # (2, R, dim) scratch
    return pl.pallas_call(
        functools.partial(_dma_gather_kernel, R),
        out_shape=jax.ShapeDtypeStruct((n_pad, dim_p), features.dtype),
        grid_spec=pltpu.PrefetchScalarGridSpec(
            num_scalar_prefetch=1,                        # idxs -> SMEM
            grid=(num_blocks,),
            in_specs=[pl.BlockSpec(memory_space=pl.ANY)], # raw HBM table ref
            out_specs=pl.BlockSpec((R, dim_p), lambda i, idxs_sm: (i, 0)),
            scratch_shapes=[
                pltpu.VMEM((2, R, dim_p), features.dtype),
                pltpu.SemaphoreType.DMA((2,)),
            ],
        ),
        compiler_params=pltpu.CompilerParams(
            # Scratch carries state across steps -> must run sequentially.
            dimension_semantics=("arbitrary",),
            vmem_limit_bytes=vmem_limit),
        cost_estimate=pl.CostEstimate(
            flops=0, transcendentals=0,
            bytes_accessed=int(2 * n_pad * dim_p * itemsize + n_pad * 4)),
    )(idxs_flat, features)


# ---------------------------------------------------------------------------
# Wrapper helpers
# ---------------------------------------------------------------------------
def _run_single_buffer_fallback(call_fn):
    # Try the single-buffered (pl.Buffered(1)) table first; fall back to the
    # default double-buffered pipeline if this Pallas build rejects it.
    try:
        return call_fn(True)
    except Exception:            # any lowering/compile rejection
        return call_fn(False)


def _run_chunked(call_fn, idxs_padded, R, n_pad):
    # Bound SMEM: scalar-prefetched indices pad to next_pow2(4*len) bytes.
    chunk = max(R, (_IDX_CHUNK // R) * R)
    if n_pad <= chunk:
        return call_fn(idxs_padded, n_pad // R, n_pad)
    outs = []
    for s in range(0, n_pad, chunk):
        piece = idxs_padded[s:s + chunk]
        m = int(piece.shape[0])
        outs.append(call_fn(piece, m // R, m))
    return jnp.concatenate(outs, axis=0)


def hnet_forward(features: jax.Array, idxs: jax.Array, *, force_path=None) -> jax.Array:
    """Pallas TPU equivalent of HNet.forward: features[idxs, :].

    Note: out-of-range indices are clamped to [0, ndata) (PyTorch would raise).
    """
    ndata, dim = features.shape
    n = int(idxs.shape[0])
    if n == 0:
        return jnp.zeros((0, dim), features.dtype)

    itemsize = jnp.dtype(features.dtype).itemsize

    # Lane-dense output blocks: pad feature dim to a multiple of 128.
    dim_p = _round_up(dim, 128)
    feats = features if dim_p == dim else jnp.pad(features, ((0, 0), (0, dim_p - dim)))

    R = _pick_rows_per_block(n, dim_p, itemsize)

    table_bytes = ndata * dim_p * itemsize
    resident_ok = table_bytes <= _resident_table_limit_bytes()
    onehot_ok = resident_ok and ndata <= _ONEHOT_MAX_NDATA

    path = force_path
    if path is None:
        path = "onehot" if onehot_ok else ("resident" if resident_ok else "dma")
    # Guard forced paths that cannot fit the VMEM budget.
    if path == "onehot" and not onehot_ok:
        path = "resident" if resident_ok else "dma"
    if path == "resident" and not resident_ok:
        path = "dma"

    if path == "onehot":
        R = _cap_rows_for_onehot(R, ndata)

    num_blocks = pl.cdiv(n, R)
    n_pad = num_blocks * R

    idxs32 = jnp.clip(idxs.astype(jnp.int32), 0, ndata - 1)
    if n_pad != n:
        idxs32 = jnp.pad(idxs32, (0, n_pad - n))          # pad with valid row 0

    if path == "onehot":
        out = _run_single_buffer_fallback(
            lambda sb: _gather_onehot(feats, idxs32.reshape(n_pad, 1),
                                      R, num_blocks, n_pad, sb))
    elif path == "resident":
        def run_res(ichunk, nblk, npd):
            return _run_single_buffer_fallback(
                lambda sb: _gather_resident(feats, ichunk, R, nblk, npd, sb))
        out = _run_chunked(run_res, idxs32, R, n_pad)
    else:
        def run_dma(ichunk, nblk, npd):
            return _gather_dma(feats, ichunk, R, nblk, npd)
        out = _run_chunked(run_dma, idxs32, R, n_pad)

    if n_pad != n:
        out = out[:n]
    if dim_p != dim:
        out = out[:, :dim]
    return out


# ---------------------------------------------------------------------------
if __name__ == "__main__":
    key = jax.random.PRNGKey(0)
    k_feat, k_idx, k_feat2, k_idx2, k_feat3, k_idx3 = jax.random.split(key, 6)

    # --- Test 1: module defaults at small shape (ndata=32, dim=128, n=8) ----
    ndata, dim, n_idx = 32, 128, 8
    features = jax.random.normal(k_feat, (ndata, dim), dtype=jnp.float32)
    idxs = jax.random.randint(k_idx, (n_idx,), 0, ndata, dtype=jnp.int32)
    ref = features[idxs, :]

    for fp in (None, "onehot", "resident", "dma"):
        out = jax.block_until_ready(hnet_forward(features, idxs, force_path=fp))
        assert out.shape == (n_idx, dim) and out.dtype == features.dtype
        assert jnp.array_equal(out, ref), f"mismatch (path={fp})"

    # --- Test 2: n not a multiple of the per-block row count (tail) ---------
    n2 = 13
    idxs2 = jax.random.randint(jax.random.PRNGKey(1), (n2,), 0, ndata, dtype=jnp.int32)
    ref2 = features[idxs2, :]
    for fp in ("resident", "dma"):
        out2 = jax.block_until_ready(hnet_forward(features, idxs2, force_path=fp))
        assert jnp.array_equal(out2, ref2), f"tail mismatch (path={fp})"

    # --- Test 3: multi-block grid (exercises cross-step DMA double-buffer) --
    ndata3, n3 = 512, 2100
    features3 = jax.random.normal(k_feat2, (ndata3, dim), dtype=jnp.float32)
    idxs3 = jax.random.randint(k_idx2, (n3,), 0, ndata3, dtype=jnp.int32)
    ref3 = features3[idxs3, :]
    for fp in ("onehot", "resident", "dma"):
        out3 = jax.block_until_ready(hnet_forward(features3, idxs3, force_path=fp))
        assert jnp.array_equal(out3, ref3), f"multi-block mismatch (path={fp})"

    # --- Test 4: non-128-multiple dim (exercises lane padding) --------------
    ndata4, dim4, n4 = 24, 96, 10
    features4 = jax.random.normal(k_feat3, (ndata4, dim4), dtype=jnp.float32)
    idxs4 = jax.random.randint(k_idx3, (n4,), 0, ndata4, dtype=jnp.int32)
    ref4 = features4[idxs4, :]
    out4 = jax.block_until_ready(hnet_forward(features4, idxs4))
    assert out4.shape == (n4, dim4)
    assert jnp.array_equal(out4, ref4), "dim-padding mismatch"

    print("KERNEL_OK")
</pallas_src>

<mosaic_0001>
module attributes {stable_mosaic.version = 11 : i64} {
  func.func @_onehot_gather_kernel(%arg0: i32, %arg1: memref<8x1xi32, #tpu.memory_space<vmem>>, %arg2: memref<32x128xf32, #tpu.memory_space<vmem>>, %arg3: memref<8x128xf32, #tpu.memory_space<vmem>>) attributes {dimension_semantics = [#tpu.dimension_semantics<parallel>], iteration_bounds = array<i64: 1>, scalar_prefetch = 0 : i64, scratch_operands = 0 : i64, tpu.core_type = #tpu.core_type<tc>, window_params = [{transform_indices = @transform_0, window_bounds = array<i64: 8, 1>}, {pipeline_mode = #tpu.pipeline_mode<synchronous>, transform_indices = @transform_1, window_bounds = array<i64: 32, 128>}, {transform_indices = @transform_2, window_bounds = array<i64: 8, 128>}]} {
    %0 = tpu.iota {dimensions = array<i32: 1>} : vector<8x32xi32>
    %c0 = arith.constant 0 : index
    %c0_0 = arith.constant 0 : index
    %1 = vector.load %arg1[%c0, %c0_0] : memref<8x1xi32, #tpu.memory_space<vmem>>, vector<8x1xi32>
    %2 = vector.broadcast %1 : vector<8x1xi32> to vector<8x32xi32>
    %3 = arith.cmpi eq, %0, %2 : vector<8x32xi32>
    %4 = arith.extui %3 : vector<8x32xi1> to vector<8x32xi32>
    %5 = arith.sitofp %4 : vector<8x32xi32> to vector<8x32xf32>
    %c0_1 = arith.constant 0 : index
    %c0_2 = arith.constant 0 : index
    %6 = vector.load %arg2[%c0_1, %c0_2] : memref<32x128xf32, #tpu.memory_space<vmem>>, vector<32x128xf32>
    %cst = arith.constant dense<0.000000e+00> : vector<8x128xf32>
    %7 = tpu.matmul %5, %6, %cst {dimension_numbers = #tpu.dot_dimension_numbers<[1], [0], [0], [1], [0, 0, 1, 1], [], []>} : vector<8x32xf32>, vector<32x128xf32>, vector<8x128xf32> -> vector<8x128xf32>
    %c0_3 = arith.constant 0 : index
    %c0_4 = arith.constant 0 : index
    %8 = vector.load %arg3[%c0_3, %c0_4] : memref<8x128xf32, #tpu.memory_space<vmem>>, vector<8x128xf32>
    tpu.vector_store %arg3[%c0_3, %c0_4], %7 {strides = array<i32>} : memref<8x128xf32, #tpu.memory_space<vmem>>, vector<8x128xf32>,
    return
  }
  func.func @transform_0(%arg0: i32) -> (i32, i32) {
    %c0_i32 = arith.constant 0 : i32
    %c0_i32_0 = arith.constant 0 : i32
    return %arg0, %c0_i32 : i32, i32
  }
  func.func @transform_1(%arg0: i32) -> (i32, i32) {
    %c0_i32 = arith.constant 0 : i32
    %c0_i32_0 = arith.constant 0 : i32
    %c0_i32_1 = arith.constant 0 : i32
    return %c0_i32, %c0_i32_0 : i32, i32
  }
  func.func @transform_2(%arg0: i32) -> (i32, i32) {
    %c0_i32 = arith.constant 0 : i32
    %c0_i32_0 = arith.constant 0 : i32
    return %arg0, %c0_i32 : i32, i32
  }
}

module attributes {stable_mosaic.version = 11 : i64} {
  func.func @_onehot_gather_kernel(%arg0: i32, %arg1: memref<8x1xi32, #tpu.memory_space<vmem>>, %arg2: memref<32x128xf32, #tpu.memory_space<vmem>>, %arg3: memref<8x128xf32, #tpu.memory_space<vmem>>) attributes {dimension_semantics = [#tpu.dimension_semantics<parallel>], iteration_bounds = array<i64: 1>, scalar_prefetch = 0 : i64, scratch_operands = 0 : i64, tpu.core_type = #tpu.core_type<tc>, window_params = [{transform_indices = @transform_0, window_bounds = array<i64: 8, 1>}, {pipeline_mode = #tpu.pipeline_mode<synchronous>, transform_indices = @transform_1, window_bounds = array<i64: 32, 128>}, {transform_indices = @transform_2, window_bounds = array<i64: 8, 128>}]} {
    %0 = tpu.iota {dimensions = array<i32: 1>} : vector<8x32xi32>
    %c0 = arith.constant 0 : index
    %c0_0 = arith.constant 0 : index
    %1 = vector.load %arg1[%c0, %c0_0] : memref<8x1xi32, #tpu.memory_space<vmem>>, vector<8x1xi32>
    %2 = vector.broadcast %1 : vector<8x1xi32> to vector<8x32xi32>
    %3 = arith.cmpi eq, %0, %2 : vector<8x32xi32>
    %4 = arith.extui %3 : vector<8x32xi1> to vector<8x32xi32>
    %5 = arith.sitofp %4 : vector<8x32xi32> to vector<8x32xf32>
    %c0_1 = arith.constant 0 : index
    %c0_2 = arith.constant 0 : index
    %6 = vector.load %arg2[%c0_1, %c0_2] : memref<32x128xf32, #tpu.memory_space<vmem>>, vector<32x128xf32>
    %cst = arith.constant dense<0.000000e+00> : vector<8x128xf32>
    %7 = tpu.matmul %5, %6, %cst {dimension_numbers = #tpu.dot_dimension_numbers<[1], [0], [0], [1], [0, 0, 1, 1], [], []>} : vector<8x32xf32>, vector<32x128xf32>, vector<8x128xf32> -> vector<8x128xf32>
    %c0_3 = arith.constant 0 : index
    %c0_4 = arith.constant 0 : index
    %8 = vector.load %arg3[%c0_3, %c0_4] : memref<8x128xf32, #tpu.memory_space<vmem>>, vector<8x128xf32>
    tpu.vector_store %arg3[%c0_3, %c0_4], %7 {strides = array<i32>} : memref<8x128xf32, #tpu.memory_space<vmem>>, vector<8x128xf32>,
    return
  }
  func.func @transform_0(%arg0: i32) -> (i32, i32) {
    %c0_i32 = arith.constant 0 : i32
    %c0_i32_0 = arith.constant 0 : i32
    return %arg0, %c0_i32 : i32, i32
  }
  func.func @transform_1(%arg0: i32) -> (i32, i32) {
    %c0_i32 = arith.constant 0 : i32
    %c0_i32_0 = arith.constant 0 : i32
    %c0_i32_1 = arith.constant 0 : i32
    return %c0_i32, %c0_i32_0 : i32, i32
  }
  func.func @transform_2(%arg0: i32) -> (i32, i32) {
    %c0_i32 = arith.constant 0 : i32
    %c0_i32_0 = arith.constant 0 : i32
    return %arg0, %c0_i32 : i32, i32
  }
}

</mosaic_0001>

<bundles_post_ra>
// kernel: tpu_custom_call.1
= control target key start
LH: loop header
LB: loop body
LE: loop exit
PB: predicated region body
PF: predicated region fallthrough
CT: control target
= control target key end

     0   :  { %7 = vsyncpa [#allocation3], 0  ;;  %s260_s0 = inlined_call_operand.vmem [shape: s32[8,1], index: 0, kind: input, shape index: {}]   ;;  %s261_s1 = inlined_call_operand.hbm [shape: f32[32,128], index: 1, kind: input, shape index: {}]   ;;  %s262_s2 = inlined_call_operand.hbm [shape: f32[8,128], index: 2, kind: output, shape index: {}]  }
   0x1   :  { %8 = vsyncpa [#allocation4], 0  ;;  %s210_s9 = smov [#allocation2]   ;;  %s162_s13 = scalar_lea.hbm %s261_s1, 512 }
   0x2   :  { %s16_s10 = sshll.u32 %s210_s9, 4  ;;  %p163_p0 = scmp.ne.s32.totalorder %s261_s1, %s162_s13  ;;  %s17_s10 = int_to_ptr.vmem [resolvable:$true] %s16_s10 }
   0x3   :  { %p166_p1 = scmp.lt.u32.totalorder %s162_s13, %s261_s1 }
   0x5   :  { %p168_p2 = pnand %p166_p1, %p163_p0 }
   0x7   :  { %171 = shalt.err (!%p168_p2)
}
   0x8   :  { %s172_s18 = scalar_lea.vmem %s17_s10, 512  ;;  %p177_p4 = scmp.lt.s32.totalorder %s17_s10, %s17_s10 }
   0x9   :  { %p173_p3 = scmp.ne.s32.totalorder %s17_s10, %s172_s18  ;;  %p178_p5 = scmp.lt.s32.totalorder %s172_s18, %s172_s18 }
   0xb   :  { %p179_p6 = por %p178_p5, %p177_p4 }
   0xd   :  { %p180_p7 = pnand %p179_p6, %p173_p3 }
   0xf   :  { %183 = shalt.err (!%p180_p7)
}
  0x10   :  { %s211_s19 = smov 128   ;;  %s212_s20 = smov 8  }
  0x11   :  { %22 = dma.hbm_to_vmem [thread:$0]  %s261_s1, 512, %s17_s10, [#allocation3], %s211_s19, %s211_s19, %s212_s20  }
  0x12   :  { %206 = dma.done.wait [#allocation3], 512  }
  0x13   :  { %207 = vsyncadd [#allocation3], 4294966784  ;;  %v213_v0 = vmov 0   ;;  %v214_v1 = vmov 0.0|0.0   ;;  %v28_v2 = vld [vmem:[%s260_s0] sm:$0xff]  ;;  %v36_v4 = vld [vmem:[#allocation2 + $0x8] sm:$0xff]  ;;  %v26_v10 = vlaneseq }
  0x14   :  { %161 = vset.pattern.permute.xlu0 %v213_v0  ;;  %147 = vmatprep.subr.bf16.mxu0 %v214_v1  ;;  %v35_v3 = vld [vmem:[#allocation2] sm:$0xff]  ;;  %v37_v6 = vld [vmem:[#allocation2 + $0x10] sm:$0xff]  ;;  %v38_v7 = vld [vmem:[#allocation2 + $0x18] sm:$0xff]  ;;  %vm215_vm0 = vmmov 0   ;;  %v216_v8 = vmov 0.0   ;;  %vm39_vm1 = vcmask 261120  }
  0x15   :  { %30 = vperm.xlu0 %161, %v28_v2   ;;  %v148_v5 = vpack.c.bf16 %v36_v4, %v35_v3  ;;  %144 = vmatprep.mubr.msk.f32.mxu0 %vm215_vm0, %v216_v8  ;;  %v151_v9 = vpack.c.bf16 %v38_v7, %v37_v6  ;;  %v27_v11 = vand.u32 127, %v26_v10  ;;  %s217_s0 = smov [#allocation5]  }
  0x16   :  { %s120_s1 = sshll.u32 %s217_s0, 4  ;;  %s121_s1 = int_to_ptr.vmem [resolvable:$true] %s120_s1 }
  0x17   :  { %149 = vmatpush3.bf16.msra.mxu0 %v148_v5  ;;  %s184_s25 = scalar_lea.vmem %s121_s1, 128  ;;  %p189_p9 = scmp.lt.s32.totalorder %s121_s1, %s121_s1 }
  0x18   :  { %150 = vmatprep.subr.bf16.mxu0 %v214_v1  ;;  %p185_p8 = scmp.ne.s32.totalorder %s121_s1, %s184_s25  ;;  %p190_p10 = scmp.lt.s32.totalorder %s184_s25, %s184_s25 }
  0x1a   :  { %p191_p11 = por %p190_p10, %p189_p9 }
  0x1b   :  { %152 = vmatpush3.bf16.msra.mxu0 %v151_v9 }
  0x1c   :  { %p192_p12 = pnand %p191_p11, %p185_p8 }
  0x94   :  { %v31_v12 = vpop.permute.xlu0 %30 }
  0x95   :  { %vm32_vm2 = vcmp.eq.s32.totalorder %v27_v11, %v31_v12 }
  0x96   :  { %v129_v13 = vsel %vm32_vm2, 1.0, %v216_v8 }
  0x97   :  { %145 = vmatmul.mubr.msk.f32.vlgmr.msra.gmra.mrb[0].mxu0 %vm39_vm1, %v129_v13 }
 0x16a   :  { %v109_v14 = vpop.f32.mrb[0].mxu0 }
 0x16b   :  { %113 = vst [vmem:[#allocation5] sm:$0xff] %v109_v14  ;;  %v146_v15 = vpop.f32.mrb[1].mxu0 }
 0x16c   :  { %195 = shalt.err (!%p192_p12)
}
 0x16d   :  { %s196_s28 = scalar_lea.hbm %s262_s2, 128 }
 0x16e   :  { %p197_p13 = scmp.ne.s32.totalorder %s262_s2, %s196_s28  ;;  %p200_p0 = scmp.lt.u32.totalorder %s196_s28, %s262_s2 }
 0x170   :  { %p202_p1 = pnand %p200_p0, %p197_p13 }
 0x172   :  { %205 = shalt.err (!%p202_p1)
}
 0x173   :  { %123 = dma.vmem_to_hbm [thread:$0]  %s121_s1, 128, %s262_s2, [#allocation4]  }
 0x174   :  { %208 = dma.done.wait [#allocation4], 128  }
 0x175   :  { %209 = vsyncadd [#allocation4], 4294967168 }
 0x176   :  { %127 = vsyncpa [#allocation3], 1 }
 0x177   :  { %128 = vsyncpa [#allocation4], 1 }

// kernel: tpu_custom_call.1
= control target key start
LH: loop header
LB: loop body
LE: loop exit
PB: predicated region body
PF: predicated region fallthrough
CT: control target
= control target key end

     0   :  { %7 = vsyncpa [#allocation3], 0  ;;  %s260_s0 = inlined_call_operand.vmem [shape: s32[8,1], index: 0, kind: input, shape index: {}]   ;;  %s261_s1 = inlined_call_operand.hbm [shape: f32[32,128], index: 1, kind: input, shape index: {}]   ;;  %s262_s2 = inlined_call_operand.hbm [shape: f32[8,128], index: 2, kind: output, shape index: {}]  }
   0x1   :  { %8 = vsyncpa [#allocation4], 0  ;;  %s210_s9 = smov [#allocation2]   ;;  %s162_s13 = scalar_lea.hbm %s261_s1, 512 }
   0x2   :  { %s16_s10 = sshll.u32 %s210_s9, 4  ;;  %p163_p0 = scmp.ne.s32.totalorder %s261_s1, %s162_s13  ;;  %s17_s10 = int_to_ptr.vmem [resolvable:$true] %s16_s10 }
   0x3   :  { %p166_p1 = scmp.lt.u32.totalorder %s162_s13, %s261_s1 }
   0x5   :  { %p168_p2 = pnand %p166_p1, %p163_p0 }
   0x7   :  { %171 = shalt.err (!%p168_p2)
}
   0x8   :  { %s172_s18 = scalar_lea.vmem %s17_s10, 512  ;;  %p177_p4 = scmp.lt.s32.totalorder %s17_s10, %s17_s10 }
   0x9   :  { %p173_p3 = scmp.ne.s32.totalorder %s17_s10, %s172_s18  ;;  %p178_p5 = scmp.lt.s32.totalorder %s172_s18, %s172_s18 }
   0xb   :  { %p179_p6 = por %p178_p5, %p177_p4 }
   0xd   :  { %p180_p7 = pnand %p179_p6, %p173_p3 }
   0xf   :  { %183 = shalt.err (!%p180_p7)
}
  0x10   :  { %s211_s19 = smov 128   ;;  %s212_s20 = smov 8  }
  0x11   :  { %22 = dma.hbm_to_vmem [thread:$0]  %s261_s1, 512, %s17_s10, [#allocation3], %s211_s19, %s211_s19, %s212_s20  }
  0x12   :  { %206 = dma.done.wait [#allocation3], 512  }
  0x13   :  { %207 = vsyncadd [#allocation3], 4294966784  ;;  %v213_v0 = vmov 0   ;;  %v214_v1 = vmov 0.0|0.0   ;;  %v28_v2 = vld [vmem:[%s260_s0] sm:$0xff]  ;;  %v36_v4 = vld [vmem:[#allocation2 + $0x8] sm:$0xff]  ;;  %v26_v10 = vlaneseq }
  0x14   :  { %161 = vset.pattern.permute.xlu0 %v213_v0  ;;  %147 = vmatprep.subr.bf16.mxu0 %v214_v1  ;;  %v35_v3 = vld [vmem:[#allocation2] sm:$0xff]  ;;  %v37_v6 = vld [vmem:[#allocation2 + $0x10] sm:$0xff]  ;;  %v38_v7 = vld [vmem:[#allocation2 + $0x18] sm:$0xff]  ;;  %vm215_vm0 = vmmov 0   ;;  %v216_v8 = vmov 0.0   ;;  %vm39_vm1 = vcmask 261120  }
  0x15   :  { %30 = vperm.xlu0 %161, %v28_v2   ;;  %v148_v5 = vpack.c.bf16 %v36_v4, %v35_v3  ;;  %144 = vmatprep.mubr.msk.f32.mxu0 %vm215_vm0, %v216_v8  ;;  %v151_v9 = vpack.c.bf16 %v38_v7, %v37_v6  ;;  %v27_v11 = vand.u32 127, %v26_v10  ;;  %s217_s0 = smov [#allocation5]  }
  0x16   :  { %s120_s1 = sshll.u32 %s217_s0, 4  ;;  %s121_s1 = int_to_ptr.vmem [resolvable:$true] %s120_s1 }
  0x17   :  { %149 = vmatpush3.bf16.msra.mxu0 %v148_v5  ;;  %s184_s25 = scalar_lea.vmem %s121_s1, 128  ;;  %p189_p9 = scmp.lt.s32.totalorder %s121_s1, %s121_s1 }
  0x18   :  { %150 = vmatprep.subr.bf16.mxu0 %v214_v1  ;;  %p185_p8 = scmp.ne.s32.totalorder %s121_s1, %s184_s25  ;;  %p190_p10 = scmp.lt.s32.totalorder %s184_s25, %s184_s25 }
  0x1a   :  { %p191_p11 = por %p190_p10, %p189_p9 }
  0x1b   :  { %152 = vmatpush3.bf16.msra.mxu0 %v151_v9 }
  0x1c   :  { %p192_p12 = pnand %p191_p11, %p185_p8 }
  0x94   :  { %v31_v12 = vpop.permute.xlu0 %30 }
  0x95   :  { %vm32_vm2 = vcmp.eq.s32.totalorder %v27_v11, %v31_v12 }
  0x96   :  { %v129_v13 = vsel %vm32_vm2, 1.0, %v216_v8 }
  0x97   :  { %145 = vmatmul.mubr.msk.f32.vlgmr.msra.gmra.mrb[0].mxu0 %vm39_vm1, %v129_v13 }
 0x16a   :  { %v109_v14 = vpop.f32.mrb[0].mxu0 }
 0x16b   :  { %113 = vst [vmem:[#allocation5] sm:$0xff] %v109_v14  ;;  %v146_v15 = vpop.f32.mrb[1].mxu0 }
 0x16c   :  { %195 = shalt.err (!%p192_p12)
}
 0x16d   :  { %s196_s28 = scalar_lea.hbm %s262_s2, 128 }
 0x16e   :  { %p197_p13 = scmp.ne.s32.totalorder %s262_s2, %s196_s28  ;;  %p200_p0 = scmp.lt.u32.totalorder %s196_s28, %s262_s2 }
 0x170   :  { %p202_p1 = pnand %p200_p0, %p197_p13 }
 0x172   :  { %205 = shalt.err (!%p202_p1)
}
 0x173   :  { %123 = dma.vmem_to_hbm [thread:$0]  %s121_s1, 128, %s262_s2, [#allocation4]  }
 0x174   :  { %208 = dma.done.wait [#allocation4], 128  }
 0x175   :  { %209 = vsyncadd [#allocation4], 4294967168 }
 0x176   :  { %127 = vsyncpa [#allocation3], 1 }
 0x177   :  { %128 = vsyncpa [#allocation4], 1 }

</bundles_post_ra>
